<compile_context>
chip_gen: v5e
topology: v5e:2x2
jax: 0.10.0
libtpu: 0.0.40
codegen_flags: <defaults>
</compile_context>

<pallas_src>
import numpy as np

import jax
import jax.numpy as jnp
from jax import lax
from jax.experimental import pallas as pl
from jax.experimental.pallas import tpu as pltpu

DROPOUT_P = 0.1
# drop when the top-24 hash bits are below this threshold
_DROP_THRESHOLD = int(DROPOUT_P * (1 << 24))


# --------------------------------------------------------------------------
# Hardware-dependent defaults
# --------------------------------------------------------------------------
def _tpu_generation():
    """Best-effort TPU generation (4/5/6/7); 0 if unknown."""
    try:
        kind = jax.devices()[0].device_kind.lower()
    except Exception:
        return 0
    for g in (7, 6, 5, 4):
        if f"v{g}" in kind:
            return g
    return 0


def _vmem_limit_bytes(gen):
    # v7x: 64 MiB physical VMEM/TC -> leave headroom for double-buffered
    # streams.  v5e/v6e: 128 MiB -> allow a higher cap so bigger tiles
    # amortize the ~0.35 us/step grid overhead.
    if gen >= 7:
        return 48 * 1024 * 1024
    if gen in (5, 6):
        return 100 * 1024 * 1024
    return 64 * 1024 * 1024


def _elementwise_dtype(param_dtype, gen):
    # v6e/v7x: native bf16 VPU/EUP -> run GELU + dropout select in bf16.
    # v5e / unknown: keep elementwise math in f32.
    if gen >= 6 and jnp.dtype(param_dtype) == jnp.dtype(jnp.bfloat16):
        return jnp.bfloat16
    return jnp.float32


# --------------------------------------------------------------------------
# Deterministic, tiling-invariant dropout mask (counter-based hash).
# Shared by the kernel (factored row/col vectors) and the pure-JAX reference.
# --------------------------------------------------------------------------
def _mix32(z):
    z = (z ^ (z >> 16)) * jnp.uint32(0x7FEB352D)
    z = (z ^ (z >> 15)) * jnp.uint32(0x846CA68B)
    return z ^ (z >> 16)


def _keep_mask(rows_u32, cols_u32, seed_u32):
    """rows: (..,1) uint32 global row ids; cols: (1,..) uint32 global col ids.

    Row/col hashes are computed on the small vectors; the per-element combine
    is one xor + one multiply-mix round + shift/compare.
    """
    row_h = _mix32(rows_u32 ^ (seed_u32 * jnp.uint32(0x9E3779B9)))
    col_h = _mix32(cols_u32 * jnp.uint32(0x85EBCA6B) + jnp.uint32(0x27D4EB2F))
    z = row_h ^ col_h                                   # broadcast (tm, tk)
    z = (z ^ (z >> 16)) * jnp.uint32(0x7FEB352D)        # single mix round
    r24 = (z >> 8).astype(jnp.int32)                    # top 24 bits, >= 0
    return r24 >= _DROP_THRESHOLD


# --------------------------------------------------------------------------
# Kernel
# --------------------------------------------------------------------------
def _make_ffn_kernel(elem_dtype):
    def kernel(seed_ref, x_ref, w1_ref, b1_ref, w2_ref, b2_ref, o_ref, acc_ref):
        # seed_ref: SMEM scalar-prefetch ref (the recorded / replayed RNG state)
        k = pl.program_id(1)

        @pl.when(k == 0)
        def _():
            acc_ref[...] = jnp.zeros_like(acc_ref)

        # Linear 1 (MXU, f32 accumulate) + bias, on this H column-tile
        h = jnp.dot(x_ref[...], w1_ref[...], preferred_element_type=jnp.float32)
        h = h + b1_ref[...].astype(jnp.float32)

        # GELU (tanh approx -> EUP); bf16 on v6e/v7x, f32 on v5e
        h = jax.nn.gelu(h.astype(elem_dtype), approximate=True)

        # ---- deterministic dropout (factored counter-based hash) ----------
        # Keys on (seed, GLOBAL row, GLOBAL col) so the mask is independent of
        # both the row tiling and the H tiling -> bit-identical replay.
        tm, tk = h.shape
        row0 = pl.program_id(0) * tm
        col0 = k * tk
        seed_u = seed_ref[0].astype(jnp.uint32)
        rows = (lax.broadcasted_iota(jnp.int32, (tm, 1), 0) + row0).astype(jnp.uint32)
        cols = (lax.broadcasted_iota(jnp.int32, (1, tk), 1) + col0).astype(jnp.uint32)
        keep = _keep_mask(rows, cols, seed_u)
        # 1/(1-p) rescale is folded into w2 once at param-load time
        h = jnp.where(keep, h, 0.0)
        # --------------------------------------------------------------------

        # Linear 2 partial product (MXU, f32 accumulate into VMEM scratch)
        acc_ref[...] += jnp.dot(h.astype(w2_ref.dtype), w2_ref[...],
                                preferred_element_type=jnp.float32)

        @pl.when(k == pl.num_programs(1) - 1)
        def _():
            y = acc_ref[...] + b2_ref[...].astype(jnp.float32)
            o_ref[...] = y.astype(o_ref.dtype)

    return kernel


def ffn_pallas(x, w1, b1, w2, b2, seed, *, tile_m=256, tile_k=1024):
    """x: (B, S, D); w1: (D, H); b1: (1, H); w2: (H, D); b2: (1, D)."""
    B, S, D = x.shape
    H = w1.shape[1]
    M = B * S
    x2 = x.reshape(M, D)

    gen = _tpu_generation()
    elem_dtype = _elementwise_dtype(w2.dtype, gen)

    # ---- row tile tm: >=16 (bf16 packing), multiple of 16, prefer a divisor
    # of M (avoids the pad + slice HBM passes).
    if M <= 16:
        tm = M
    else:
        tm = min(tile_m, M)
        tm = max(16, (tm // 16) * 16)
        if M % tm != 0:
            cand = tm
            while cand >= 16:
                if M % cand == 0:
                    tm = cand
                    break
                cand -= 16
    # v7x: prefer an even number of row tiles so both TensorCores stay busy.
    if gen >= 7 and tm > 16 and M % tm == 0 and (M // tm) % 2 == 1:
        half = max(16, ((tm // 2) // 16) * 16)
        if M % half == 0:
            tm = half

    Mp = ((M + tm - 1) // tm) * tm
    if Mp != M:
        # TODO(synk): an in-kernel masked tail tile would avoid this pad/slice.
        x2 = jnp.pad(x2, ((0, Mp - M), (0, 0)))
    n_rows = Mp // tm

    # ---- H (reduction) tile tk: multiple of 128 that divides H, else full H.
    tk = H
    if H > tile_k:
        cand = (min(tile_k, H) // 128) * 128
        while cand >= 128:
            if H % cand == 0:
                tk = cand
                break
            cand -= 128
    n_k = H // tk

    seed_arr = jnp.asarray([seed], dtype=jnp.int32)

    cost = pl.CostEstimate(
        flops=4 * Mp * D * H,
        transcendentals=Mp * H,
        bytes_accessed=int(2 * Mp * D * x.dtype.itemsize
                           + n_rows * (2 * D * H + H + D) * w1.dtype.itemsize),
    )

    out = pl.pallas_call(
        _make_ffn_kernel(elem_dtype),
        out_shape=jax.ShapeDtypeStruct((Mp, D), x.dtype),
        grid_spec=pltpu.PrefetchScalarGridSpec(
            num_scalar_prefetch=1,                      # seed lives in SMEM
            grid=(n_rows, n_k),                         # reduction axis last
            in_specs=[
                pl.BlockSpec((tm, D), lambda i, k, seed: (i, 0)),   # x row tile
                pl.BlockSpec((D, tk), lambda i, k, seed: (0, k)),   # w1 col tile
                pl.BlockSpec((1, tk), lambda i, k, seed: (0, k)),   # b1 tile
                pl.BlockSpec((tk, D), lambda i, k, seed: (k, 0)),   # w2 row tile
                pl.BlockSpec((1, D), lambda i, k, seed: (0, 0)),    # b2 resident
            ],
            out_specs=pl.BlockSpec((tm, D), lambda i, k, seed: (i, 0)),
            scratch_shapes=[pltpu.VMEM((tm, D), jnp.float32)],      # f32 acc
        ),
        compiler_params=pltpu.CompilerParams(
            dimension_semantics=("parallel", "arbitrary"),
            vmem_limit_bytes=_vmem_limit_bytes(gen),
        ),
        cost_estimate=cost,
    )(seed_arr, x2, w1, b1, w2, b2)

    if Mp != M:
        out = out[:M]
    return out.reshape(B, S, D)


# --------------------------------------------------------------------------
# Pure-JAX reference (same math, same hash) for correctness checking.
# --------------------------------------------------------------------------
def ffn_reference(x, w1, b1, w2, b2, seed):
    gen = _tpu_generation()
    elem_dtype = _elementwise_dtype(w2.dtype, gen)
    B, S, D = x.shape
    H = w1.shape[1]
    M = B * S
    x2 = x.reshape(M, D)
    h = jnp.dot(x2, w1, preferred_element_type=jnp.float32)
    h = h + b1.astype(jnp.float32)
    h = jax.nn.gelu(h.astype(elem_dtype), approximate=True)
    rows = jnp.arange(M, dtype=jnp.uint32).reshape(M, 1)
    cols = jnp.arange(H, dtype=jnp.uint32).reshape(1, H)
    keep = _keep_mask(rows, cols, jnp.uint32(seed))
    h = jnp.where(keep, h, 0.0)
    y = jnp.dot(h.astype(w2.dtype), w2, preferred_element_type=jnp.float32)
    y = y + b2.astype(jnp.float32)
    return y.astype(x.dtype).reshape(B, S, D)


# --------------------------------------------------------------------------
# The stochastic inner net + the Deterministic wrapper
# --------------------------------------------------------------------------
class FeedForward:
    """The stochastic inner `net` wrapped by Deterministic."""

    def __init__(self, params, dropout_p=DROPOUT_P, tile_m=256, tile_k=1024):
        w1, b1, w2, b2 = params
        self.w1 = w1
        self.b1 = b1
        # Fold the 1/(1-p) dropout rescale into w2 once (one-time transform,
        # removes a per-element multiply from the kernel).  b2 is NOT scaled.
        self.w2 = (w2.astype(jnp.float32) / (1.0 - dropout_p)).astype(w2.dtype)
        self.b2 = b2
        self.tile_m = tile_m
        self.tile_k = tile_k

    def __call__(self, x, seed):
        return ffn_pallas(x, self.w1, self.b1, self.w2, self.b2, seed,
                          tile_m=self.tile_m, tile_k=self.tile_k)


class Deterministic:
    """JAX port of nocache_attention.Deterministic.

    forward(*args, record_rng=False, set_rng=False):
      - record_rng=True : snapshot the RNG state (here: the dropout seed)
      - set_rng=False   : run net with the currently supplied RNG state
      - set_rng=True    : replay net with the previously recorded RNG state,
                          guaranteeing a bit-identical second forward pass.
    """
    # TODO(synk): torch.get_rng_state / get_device_states / fork_rng have no JAX
    # equivalent; JAX RNG is functional, so recording the seed is the state snapshot.

    def __init__(self, net):
        self.net = net
        self.recorded_seed = None

    def record_rng(self, seed):
        self.recorded_seed = seed

    def __call__(self, *args, seed=None, record_rng=False, set_rng=False, **kwargs):
        if record_rng:
            self.record_rng(seed)
        if not set_rng:
            return self.net(*args, seed=seed, **kwargs)
        return self.net(*args, seed=self.recorded_seed, **kwargs)


def init_params(key, d_model, d_ff, dtype=jnp.bfloat16):
    k1, k2, k3, k4 = jax.random.split(key, 4)
    s1 = 1.0 / (d_model ** 0.5)
    s2 = 1.0 / (d_ff ** 0.5)
    w1 = (jax.random.normal(k1, (d_model, d_ff)) * s1).astype(dtype)
    b1 = (jax.random.normal(k2, (1, d_ff)) * 0.01).astype(dtype)
    w2 = (jax.random.normal(k3, (d_ff, d_model)) * s2).astype(dtype)
    b2 = (jax.random.normal(k4, (1, d_model)) * 0.01).astype(dtype)
    return (w1, b1, w2, b2)


if __name__ == "__main__":
    # Small demo shapes.  NOTE: for production, D and H should be multiples of
    # 128 (256 on v6e/v7x) so the output stays lane-dense and the MXU is full.
    B, S, D, H = 2, 16, 32, 64
    dtype = jnp.bfloat16   # bf16 MXU operands, f32 accumulate in-kernel

    key = jax.random.PRNGKey(0)
    kx, kp = jax.random.split(key)

    x = jax.random.normal(kx, (B, S, D), dtype=jnp.float32).astype(dtype)
    params = init_params(kp, D, H, dtype=dtype)

    # tile_m=16 -> two row tiles on this demo (exercises the pipeline and the
    # per-tile global-row/global-col seeding path).
    net = FeedForward(params, tile_m=16)
    det = Deterministic(net)

    # first forward: record the RNG state used for dropout
    y1 = jax.block_until_ready(det(x, seed=1234, record_rng=True))

    # second forward (as inside backward): replay the recorded RNG state,
    # ignoring whatever seed is supplied now -> must be bit-identical
    y2 = jax.block_until_ready(det(x, seed=9999, set_rng=True))

    assert y1.shape == (B, S, D)
    assert y1.dtype == jnp.dtype(dtype)
    assert bool(jnp.all(jnp.isfinite(y1.astype(jnp.float32))))
    assert bool(jnp.array_equal(y1, y2)), "replayed forward is not identical"

    # tiling invariance: the dropout hash keys on GLOBAL (row, col) indices, so
    # a different row tiling must give the exact same result for the same seed.
    w1_, b1_, w2_, b2_ = net.w1, net.b1, net.w2, net.b2
    y_t16 = jax.block_until_ready(ffn_pallas(x, w1_, b1_, w2_, b2_, 1234, tile_m=16))
    y_t32 = jax.block_until_ready(ffn_pallas(x, w1_, b1_, w2_, b2_, 1234, tile_m=32))
    assert bool(jnp.array_equal(y_t16, y_t32)), "dropout mask is tiling-dependent"
    assert bool(jnp.array_equal(y_t16, y1))

    # pure-JAX reference (same math, same hash); loose tolerance for bf16.
    y_ref = ffn_reference(x, w1_, b1_, w2_, b2_, 1234)
    np.testing.assert_allclose(np.asarray(y1, dtype=np.float32),
                               np.asarray(y_ref, dtype=np.float32),
                               rtol=0.1, atol=0.1)

    print("KERNEL_OK")
</pallas_src>

<mosaic_0001>
module attributes {stable_mosaic.version = 11 : i64} {
  func.func @kernel(%arg0: i32, %arg1: i32, %arg2: memref<1xi32, #tpu.memory_space<smem>>, %arg3: memref<16x32xbf16, #tpu.memory_space<vmem>>, %arg4: memref<32x64xbf16, #tpu.memory_space<vmem>>, %arg5: memref<1x64xbf16, #tpu.memory_space<vmem>>, %arg6: memref<64x32xbf16, #tpu.memory_space<vmem>>, %arg7: memref<1x32xbf16, #tpu.memory_space<vmem>>, %arg8: memref<16x32xbf16, #tpu.memory_space<vmem>>, %arg9: memref<16x32xf32, #tpu.memory_space<vmem>>) attributes {dimension_semantics = [#tpu.dimension_semantics<parallel>, #tpu.dimension_semantics<arbitrary>], iteration_bounds = array<i64: 2, 1>, scalar_prefetch = 1 : i64, scratch_operands = 1 : i64, tpu.core_type = #tpu.core_type<tc>, window_params = [{transform_indices = @transform_0, window_bounds = array<i64: 16, 32>}, {transform_indices = @transform_1, window_bounds = array<i64: 32, 64>}, {transform_indices = @transform_2, window_bounds = array<i64: 1, 64>}, {transform_indices = @transform_3, window_bounds = array<i64: 64, 32>}, {pipeline_mode = #tpu.pipeline_mode<synchronous>, transform_indices = @transform_4, window_bounds = array<i64: 1, 32>}, {transform_indices = @transform_5, window_bounds = array<i64: 16, 32>}]} {
    %c0_i32 = arith.constant 0 : i32
    %0 = arith.cmpi eq, %arg1, %c0_i32 : i32
    %1 = arith.extui %0 : i1 to i32
    %c0_i32_0 = arith.constant 0 : i32
    %2 = arith.cmpi ne, %1, %c0_i32_0 : i32
    scf.if %2 {
      %cst_30 = arith.constant 0.000000e+00 : f32
      %88 = vector.broadcast %cst_30 : f32 to vector<16x32xf32>
      %c0_31 = arith.constant 0 : index
      %c0_32 = arith.constant 0 : index
      %89 = vector.load %arg9[%c0_31, %c0_32] : memref<16x32xf32, #tpu.memory_space<vmem>>, vector<16x32xf32>
      tpu.vector_store %arg9[%c0_31, %c0_32], %88 {strides = array<i32>} : memref<16x32xf32, #tpu.memory_space<vmem>>, vector<16x32xf32>,
    } else {
    }
    %c0 = arith.constant 0 : index
    %c0_1 = arith.constant 0 : index
    %3 = vector.load %arg3[%c0, %c0_1] : memref<16x32xbf16, #tpu.memory_space<vmem>>, vector<16x32xbf16>
    %c0_2 = arith.constant 0 : index
    %c0_3 = arith.constant 0 : index
    %4 = vector.load %arg4[%c0_2, %c0_3] : memref<32x64xbf16, #tpu.memory_space<vmem>>, vector<32x64xbf16>
    %cst = arith.constant dense<0.000000e+00> : vector<16x64xf32>
    %5 = tpu.matmul %3, %4, %cst {dimension_numbers = #tpu.dot_dimension_numbers<[1], [0], [0], [1], [0, 0, 1, 1], [], []>} : vector<16x32xbf16>, vector<32x64xbf16>, vector<16x64xf32> -> vector<16x64xf32>
    %c0_4 = arith.constant 0 : index
    %c0_5 = arith.constant 0 : index
    %6 = vector.load %arg5[%c0_4, %c0_5] : memref<1x64xbf16, #tpu.memory_space<vmem>>, vector<1x64xbf16>
    %7 = arith.extf %6 : vector<1x64xbf16> to vector<1x64xf32>
    %8 = vector.broadcast %7 : vector<1x64xf32> to vector<16x64xf32>
    %9 = arith.addf %5, %8 : vector<16x64xf32>
    %10 = arith.mulf %9, %9 : vector<16x64xf32>
    %11 = arith.mulf %9, %10 : vector<16x64xf32>
    %cst_6 = arith.constant 4.471500e-02 : f32
    %12 = vector.broadcast %cst_6 : f32 to vector<16x64xf32>
    %13 = arith.mulf %12, %11 : vector<16x64xf32>
    %14 = arith.addf %9, %13 : vector<16x64xf32>
    %cst_7 = arith.constant 0.797884583 : f32
    %15 = vector.broadcast %cst_7 : f32 to vector<16x64xf32>
    %16 = arith.mulf %15, %14 : vector<16x64xf32>
    %17 = math.tanh %16 : vector<16x64xf32>
    %cst_8 = arith.constant 1.000000e+00 : f32
    %18 = vector.broadcast %cst_8 : f32 to vector<16x64xf32>
    %19 = arith.addf %18, %17 : vector<16x64xf32>
    %cst_9 = arith.constant 5.000000e-01 : f32
    %20 = vector.broadcast %cst_9 : f32 to vector<16x64xf32>
    %21 = arith.mulf %20, %19 : vector<16x64xf32>
    %22 = arith.mulf %9, %21 : vector<16x64xf32>
    %c16_i32 = arith.constant 16 : i32
    %23 = arith.muli %arg0, %c16_i32 : i32
    %c64_i32 = arith.constant 64 : i32
    %24 = arith.muli %arg1, %c64_i32 : i32
    %c0_10 = arith.constant 0 : index
    %25 = memref.load %arg2[%c0_10] : memref<1xi32, #tpu.memory_space<smem>>
    %26 = tpu.iota {dimensions = array<i32: 0>} : vector<16x1xi32>
    %27 = vector.broadcast %23 : i32 to vector<16x1xi32>
    %28 = arith.addi %26, %27 : vector<16x1xi32>
    %29 = tpu.iota {dimensions = array<i32: 1>} : vector<1x64xi32>
    %30 = vector.broadcast %24 : i32 to vector<1x64xi32>
    %31 = arith.addi %29, %30 : vector<1x64xi32>
    %c-1640531527_i32 = arith.constant -1640531527 : i32
    %32 = arith.muli %25, %c-1640531527_i32 : i32
    %33 = vector.broadcast %32 : i32 to vector<16x1xi32>
    %34 = arith.xori %28, %33 : vector<16x1xi32>
    %c16_i32_11 = arith.constant 16 : i32
    %35 = vector.broadcast %c16_i32_11 : i32 to vector<16x1xi32>
    %36 = arith.shrui %34, %35 : vector<16x1xi32>
    %37 = arith.xori %34, %36 : vector<16x1xi32>
    %c2146121005_i32 = arith.constant 2146121005 : i32
    %38 = vector.broadcast %c2146121005_i32 : i32 to vector<16x1xi32>
    %39 = arith.muli %37, %38 : vector<16x1xi32>
    %c15_i32 = arith.constant 15 : i32
    %40 = vector.broadcast %c15_i32 : i32 to vector<16x1xi32>
    %41 = arith.shrui %39, %40 : vector<16x1xi32>
    %42 = arith.xori %39, %41 : vector<16x1xi32>
    %c-2073254261_i32 = arith.constant -2073254261 : i32
    %43 = vector.broadcast %c-2073254261_i32 : i32 to vector<16x1xi32>
    %44 = arith.muli %42, %43 : vector<16x1xi32>
    %c16_i32_12 = arith.constant 16 : i32
    %45 = vector.broadcast %c16_i32_12 : i32 to vector<16x1xi32>
    %46 = arith.shrui %44, %45 : vector<16x1xi32>
    %47 = arith.xori %44, %46 : vector<16x1xi32>
    %c-2048144789_i32 = arith.constant -2048144789 : i32
    %48 = vector.broadcast %c-2048144789_i32 : i32 to vector<1x64xi32>
    %49 = arith.muli %31, %48 : vector<1x64xi32>
    %c668265263_i32 = arith.constant 668265263 : i32
    %50 = vector.broadcast %c668265263_i32 : i32 to vector<1x64xi32>
    %51 = arith.addi %49, %50 : vector<1x64xi32>
    %c16_i32_13 = arith.constant 16 : i32
    %52 = vector.broadcast %c16_i32_13 : i32 to vector<1x64xi32>
    %53 = arith.shrui %51, %52 : vector<1x64xi32>
    %54 = arith.xori %51, %53 : vector<1x64xi32>
    %c2146121005_i32_14 = arith.constant 2146121005 : i32
    %55 = vector.broadcast %c2146121005_i32_14 : i32 to vector<1x64xi32>
    %56 = arith.muli %54, %55 : vector<1x64xi32>
    %c15_i32_15 = arith.constant 15 : i32
    %57 = vector.broadcast %c15_i32_15 : i32 to vector<1x64xi32>
    %58 = arith.shrui %56, %57 : vector<1x64xi32>
    %59 = arith.xori %56, %58 : vector<1x64xi32>
    %c-2073254261_i32_16 = arith.constant -2073254261 : i32
    %60 = vector.broadcast %c-2073254261_i32_16 : i32 to vector<1x64xi32>
    %61 = arith.muli %59, %60 : vector<1x64xi32>
    %c16_i32_17 = arith.constant 16 : i32
    %62 = vector.broadcast %c16_i32_17 : i32 to vector<1x64xi32>
    %63 = arith.shrui %61, %62 : vector<1x64xi32>
    %64 = arith.xori %61, %63 : vector<1x64xi32>
    %65 = vector.broadcast %47 : vector<16x1xi32> to vector<16x64xi32>
    %66 = vector.broadcast %64 : vector<1x64xi32> to vector<16x64xi32>
    %67 = arith.xori %65, %66 : vector<16x64xi32>
    %c16_i32_18 = arith.constant 16 : i32
    %68 = vector.broadcast %c16_i32_18 : i32 to vector<16x64xi32>
    %69 = arith.shrui %67, %68 : vector<16x64xi32>
    %70 = arith.xori %67, %69 : vector<16x64xi32>
    %c2146121005_i32_19 = arith.constant 2146121005 : i32
    %71 = vector.broadcast %c2146121005_i32_19 : i32 to vector<16x64xi32>
    %72 = arith.muli %70, %71 : vector<16x64xi32>
    %c8_i32 = arith.constant 8 : i32
    %73 = vector.broadcast %c8_i32 : i32 to vector<16x64xi32>
    %74 = arith.shrui %72, %73 : vector<16x64xi32>
    %c1677721_i32 = arith.constant 1677721 : i32
    %75 = vector.broadcast %c1677721_i32 : i32 to vector<16x64xi32>
    %76 = arith.cmpi sge, %74, %75 : vector<16x64xi32>
    %cst_20 = arith.constant 0.000000e+00 : f32
    %77 = vector.broadcast %cst_20 : f32 to vector<16x64xf32>
    %78 = arith.select %76, %22, %77 : vector<16x64xi1>, vector<16x64xf32>
    %c0_21 = arith.constant 0 : index
    %c0_22 = arith.constant 0 : index
    %79 = vector.load %arg9[%c0_21, %c0_22] : memref<16x32xf32, #tpu.memory_space<vmem>>, vector<16x32xf32>
    %80 = arith.truncf %78 : vector<16x64xf32> to vector<16x64xbf16>
    %c0_23 = arith.constant 0 : index
    %c0_24 = arith.constant 0 : index
    %81 = vector.load %arg6[%c0_23, %c0_24] : memref<64x32xbf16, #tpu.memory_space<vmem>>, vector<64x32xbf16>
    %cst_25 = arith.constant dense<0.000000e+00> : vector<16x32xf32>
    %82 = tpu.matmul %80, %81, %cst_25 {dimension_numbers = #tpu.dot_dimension_numbers<[1], [0], [0], [1], [0, 0, 1, 1], [], []>} : vector<16x64xbf16>, vector<64x32xbf16>, vector<16x32xf32> -> vector<16x32xf32>
    %83 = arith.addf %79, %82 : vector<16x32xf32>
    %c0_26 = arith.constant 0 : index
    %c0_27 = arith.constant 0 : index
    %84 = vector.load %arg9[%c0_26, %c0_27] : memref<16x32xf32, #tpu.memory_space<vmem>>, vector<16x32xf32>
    tpu.vector_store %arg9[%c0_26, %c0_27], %83 {strides = array<i32>} : memref<16x32xf32, #tpu.memory_space<vmem>>, vector<16x32xf32>,
    %c0_i32_28 = arith.constant 0 : i32
    %85 = arith.cmpi eq, %arg1, %c0_i32_28 : i32
    %86 = arith.extui %85 : i1 to i32
    %c0_i32_29 = arith.constant 0 : i32
    %87 = arith.cmpi ne, %86, %c0_i32_29 : i32
    scf.if %87 {
      %c0_30 = arith.constant 0 : index
      %c0_31 = arith.constant 0 : index
      %88 = vector.load %arg9[%c0_30, %c0_31] : memref<16x32xf32, #tpu.memory_space<vmem>>, vector<16x32xf32>
      %c0_32 = arith.constant 0 : index
      %c0_33 = arith.constant 0 : index
      %89 = vector.load %arg7[%c0_32, %c0_33] : memref<1x32xbf16, #tpu.memory_space<vmem>>, vector<1x32xbf16>
      %90 = arith.extf %89 : vector<1x32xbf16> to vector<1x32xf32>
      %91 = vector.broadcast %90 : vector<1x32xf32> to vector<16x32xf32>
      %92 = arith.addf %88, %91 : vector<16x32xf32>
      %93 = arith.truncf %92 : vector<16x32xf32> to vector<16x32xbf16>
      %c0_34 = arith.constant 0 : index
      %c0_35 = arith.constant 0 : index
      %94 = vector.load %arg8[%c0_34, %c0_35] : memref<16x32xbf16, #tpu.memory_space<vmem>>, vector<16x32xbf16>
      tpu.vector_store %arg8[%c0_34, %c0_35], %93 {strides = array<i32>} : memref<16x32xbf16, #tpu.memory_space<vmem>>, vector<16x32xbf16>,
    } else {
    }
    return
  }
  func.func @transform_0(%arg0: i32, %arg1: i32, %arg2: memref<1xi32, #tpu.memory_space<smem>>) -> (i32, i32) {
    %c0_i32 = arith.constant 0 : i32
    %c0_i32_0 = arith.constant 0 : i32
    return %arg0, %c0_i32 : i32, i32
  }
  func.func @transform_1(%arg0: i32, %arg1: i32, %arg2: memref<1xi32, #tpu.memory_space<smem>>) -> (i32, i32) {
    %c0_i32 = arith.constant 0 : i32
    %c0_i32_0 = arith.constant 0 : i32
    return %c0_i32, %arg1 : i32, i32
  }
  func.func @transform_2(%arg0: i32, %arg1: i32, %arg2: memref<1xi32, #tpu.memory_space<smem>>) -> (i32, i32) {
    %c0_i32 = arith.constant 0 : i32
    %c0_i32_0 = arith.constant 0 : i32
    return %c0_i32, %arg1 : i32, i32
  }
  func.func @transform_3(%arg0: i32, %arg1: i32, %arg2: memref<1xi32, #tpu.memory_space<smem>>) -> (i32, i32) {
    %c0_i32 = arith.constant 0 : i32
    %c0_i32_0 = arith.constant 0 : i32
    return %arg1, %c0_i32 : i32, i32
  }
  func.func @transform_4(%arg0: i32, %arg1: i32, %arg2: memref<1xi32, #tpu.memory_space<smem>>) -> (i32, i32) {
    %c0_i32 = arith.constant 0 : i32
    %c0_i32_0 = arith.constant 0 : i32
    %c0_i32_1 = arith.constant 0 : i32
    return %c0_i32, %c0_i32_0 : i32, i32
  }
  func.func @transform_5(%arg0: i32, %arg1: i32, %arg2: memref<1xi32, #tpu.memory_space<smem>>) -> (i32, i32) {
    %c0_i32 = arith.constant 0 : i32
    %c0_i32_0 = arith.constant 0 : i32
    return %arg0, %c0_i32 : i32, i32
  }
}

</mosaic_0001>

<bundles_post_ra>
// kernel: tpu_custom_call.1
= control target key start
LH: loop header
LB: loop body
LE: loop exit
PB: predicated region body
PF: predicated region fallthrough
CT: control target
= control target key end

     0   :  { %s984_s0 = inlined_call_operand.<no memory space> [shape: s32[1], index: 0, kind: input, shape index: {}]   ;;  %s985_s1 = inlined_call_operand.vmem [shape: bf16[32,32], index: 1, kind: input, shape index: {}]   ;;  %s986_s2 = inlined_call_operand.vmem [shape: bf16[32,64], index: 2, kind: input, shape index: {}]   ;;  %s987_s3 = inlined_call_operand.vmem [shape: bf16[1,64], index: 3, kind: input, shape index: {}]   ;;  %s988_s4 = inlined_call_operand.vmem [shape: bf16[64,32], index: 4, kind: input, shape index: {}]   ;;  %s989_s5 = inlined_call_operand.vmem [shape: bf16[1,32], index: 5, kind: input, shape index: {}]   ;;  %s990_s6 = inlined_call_operand.hbm [shape: bf16[32,32], index: 6, kind: output, shape index: {}]  }
   0x1   :  { %11 = sst [smem:[#allocation4]] %s984_s0 }
   0x2   :  { %12 = vsyncpa [#allocation6], 0 }
   0x3   :  { %14 = vsyncpa [#allocation6 + $0x1], 0  ;;  %s858_s23 = smov 0   ;;  %s860_s24 = smov 0  }
   0x4   :  { %s862_s25 = smov 0   ;;  %s864_s26 = smov 0  }
   0x5   :  { %s866_s27 = smov 0   ;;  %s868_s28 = smov 0  }
   0x6 LB: > { %s620_s0 = sadd.s32 4294967295, %s815_s28   ;;  %s621_s29 = sadd.s32 4294967294, %s815_s28   ;;  %s815_s28 = sphi %s868_s28, %s20_s28   ;;  %s811_s27 = sphi %s866_s27, %s997_s27   ;;  %s807_s26 = sphi %s864_s26, %s996_s26   ;;  %s803_s25 = sphi %s862_s25, %s995_s25   ;;  %s799_s24 = sphi %s860_s24, %s994_s24   ;;  %s795_s23 = sphi %s858_s23, %s993_s23  }
   0x7   : > { %s32_s30 = sadd.s32 1, %s811_s27  ;;  %s164_s7 = sadd.s32 1, %s803_s25 }
   0x8   : > { %p34_p0 = scmp.ge.s32.totalorder %s32_s30, 2  ;;  %p174_p1 = scmp.ne.s32.totalorder %s803_s25, %s799_s24 }
   0x9   : > { %p175_p2 = scmp.eq.s32.totalorder %s620_s0, 1  ;;  %p180_p3 = scmp.ne.s32.totalorder %s799_s24, %s795_s23 }
   0xa   : > { %s999_s30 = smov (%p34_p0, %s32_s30), 0  ;;  %p181_p5 = scmp.eq.s32.totalorder %s621_s29, 1 }
   0xb   : > { %p898_p4 = por %p175_p2, %p174_p1  ;;  %s161_s9 = ssub.s32 %s811_s27, %s999_s30 }
   0xc   : > { %p627_p6 = scmp.ge.s32.totalorder %s815_s28, 1  ;;  %p162_p7 = scmp.eq.s32.totalorder %s161_s9, 0 }
   0xd   : > { %p905_p8 = por %p181_p5, %p180_p3  ;;  %p233_p9 = scmp.lt.s32.totalorder %s815_s28, 3 }
   0xe   : > { %s911_s11 = scalar_select %p162_p7, %s803_s25, %s164_s7  }
   0xf   : > { %p234_p10 = pnand %p627_p6, %p233_p9 }
  0x10   : > { %s629_s14 = sshll.u32 (!%p234_p10), %s807_s26, 1  ;;  %s365_s21 = sld [smem:[#allocation4]] (!%p234_p10) }
  0x11   : > { %237 = sbr.rel (%p234_p10) target bundleno = 344 (0x158), region = 40  ;;  %p274_p11 = scmp.lt.s32.totalorder (!%p234_p10), %s629_s14, 3 }
  0x12   : > { %s644_s22 = sshll.u32 (!%p234_p10), %s807_s26, 4  ;;  %s757_s19 = scalar_lea.hbm (!%p234_p10), %s990_s6, 16 }
  0x16   : > { %v669_v0 = vld [vmem:[%s986_s2 + $0x8] sm:$0xff]  ;;  %v668_v1 = vld [vmem:[%s986_s2] sm:$0xff]  ;;  %s1001_s14 = smov (!%p274_p11, %s629_s14), 3  ;;  %vm298_vm0 = vcmask 261120   ;;  %v366_v3 = vlaneseq  ;;  %v369_v6 = vstv %s644_s22  ;;  %s376_s0 = smul.u32 2654435769, %s365_s21 }
  0x17   : > { %337 = vmatpush.bf16.msra.mxu0 %v669_v0  ;;  %s630_s17 = sshll.u32 %s1001_s14, 2  ;;  %v673_v24 = vld [vmem:[%s988_s4 + $0x18] sm:$0xff]  ;;  %v307_v25 = vld [vmem:[%s987_s3] sm:$0x1]  ;;  %v672_v26 = vld [vmem:[%s988_s4 + $0x10] sm:$0xff]  ;;  %v817_v47 = vmov 0.0  }
  0x18   : > { %s277_s20 = scalar_lea.vmem %s985_s1, %s630_s17  ;;  %v367_v4 = vshrl.u32 %v366_v3, 7  ;;  %v373_v5 = vand.u32 127, %v366_v3  ;;  %v377_v11 = vstv %s376_s0  ;;  %463 = vmatpush.bf16.msra.mxu1 %v673_v24  ;;  %v308_v30 = vunpack.c.l.bf16 %v307_v25  ;;  %v671_v31 = vld [vmem:[%s988_s4 + $0x8] sm:$0xff]  ;;  %v670_v36 = vld [vmem:[%s988_s4] sm:$0xff]  ;;  %299 = vst.msk [vmem:[#allocation2] sm:$0xff] %vm298_vm0, %v817_v47  ;;  %s270_s21 = sand.u32 1, %s799_s24  }
  0x19   : > { %v667_v2 = vld [vmem:[%s277_s20] sm:$0xff]  ;;  %300 = vst.msk [vmem:[#allocation2 + $0x8] sm:$0xff] %vm298_vm0, %v817_v47  ;;  %vm455_vm3 = vcmask 523264   ;;  %s628_s22 = sshll.u32 %s270_s21, 3  ;;  %s674_s0 = sshll.u32 %s807_s26, 3  ;;  %vm489_vm4 = vcmask 257024  }
  0x1a   : > { %v368_v7 = vadd.s32 8, %v367_v4  ;;  %v370_v8 = vadd.s32 %v369_v6, %v367_v4  ;;  %v396_v10 = vmul.u32 2246822507, %v373_v5  ;;  %v309_v35 = vperm.slane %v308_v30, 0  ;;  %s504_s9 = scalar_lea.hbm %s990_s6, %s674_s0  ;;  %s272_s12 = scalar_lea.vmem [#allocation5], %s628_s22 }
  0x1b   : > { %338 = vmatpush.bf16.msra.mxu0 %v668_v1  ;;  %s505_s13 = sshll.u32 %s272_s12, 4  ;;  %s507_s14 = sshll.u32 %s504_s9, 4  ;;  %s506_s13 = int_to_ptr.vmem [resolvable:$true] %s505_s13  ;;  %s508_s14 = int_to_ptr.hbm [resolvable:$true] %s507_s14 }
  0x1c   : > { %v371_v9 = vadd.s32 %v369_v6, %v368_v7  ;;  %v378_v12 = vxor.u32 %v377_v11, %v370_v8  ;;  %v397_v14 = vadd.s32 668265263, %v396_v10  ;;  %464 = vmatpush.bf16.msra.mxu1 %v672_v26  ;;  %s493_s15 = scalar_lea.sflag [#allocation6], %s270_s21  ;;  %s751_s16 = sshra.s32 %s508_s14, 4  ;;  %s752_s16 = int_to_ptr.hbm [resolvable:$true] %s751_s16 }
  0x1d   : > { %s753_s26 = scalar_lea.hbm %s752_s16, 8  ;;  %p758_p1 = scmp.lt.s32.totalorder %s752_s16, %s990_s6 }
  0x1e   : > { %643 = vmatmul.msk.bf16.vlgmr.msra.gmra.mxu0 %vm298_vm0, %v667_v2  ;;  %v379_v13 = vxor.u32 %v377_v11, %v371_v9  ;;  %v380_v15 = vshrl.u32 %v378_v12, 16  ;;  %v398_v17 = vshrl.u32 %v397_v14, 16  ;;  %p754_p12 = scmp.ne.s32.totalorder %s752_s16, %s753_s26  ;;  %p759_p2 = scmp.lt.s32.totalorder %s757_s19, %s753_s26 }
  0x20   : > { %v381_v16 = vshrl.u32 %v379_v13, 16  ;;  %v382_v18 = vxor.u32 %v380_v15, %v378_v12  ;;  %v399_v20 = vxor.u32 %v398_v17, %v397_v14  ;;  %465 = vmatpush.bf16.msra.mxu1 %v671_v31  ;;  %p755_p13 = pnand %p754_p12, %p898_p4  ;;  %p760_p3 = por %p759_p2, %p758_p1 }
  0x22   : > { %v383_v19 = vxor.u32 %v381_v16, %v379_v13  ;;  %v384_v21 = vmul.u32 2146121005, %v382_v18  ;;  %v400_v23 = vmul.u32 2146121005, %v399_v20  ;;  %v420_v18 = vld [vmem:[#allocation2] sm:$0xff]  ;;  %p756_p0 = pneg %p755_p13 }
  0x23   : > { %v482_v20 = vld [vmem:[%s989_s5] sm:$0x1] }
  0x24   : > { %v385_v22 = vmul.u32 2146121005, %v383_v19  ;;  %v386_v27 = vshrl.u32 %v384_v21, 15  ;;  %v401_v29 = vshrl.u32 %v400_v23, 15  ;;  %466 = vmatpush.bf16.msra.mxu1 %v670_v36  ;;  %p761_p5 = pnand %p760_p3, %p756_p0 }
  0x26   : > { %v387_v28 = vshrl.u32 %v385_v22, 15  ;;  %v388_v32 = vxor.u32 %v386_v27, %v384_v21  ;;  %v402_v34 = vxor.u32 %v401_v29, %v400_v23  ;;  %v421_v23 = vld [vmem:[#allocation2 + $0x8] sm:$0xff] }
  0x28   : > { %v389_v33 = vxor.u32 %v387_v28, %v385_v22  ;;  %v390_v37 = vmul.u32 2221713035, %v388_v32  ;;  %v403_v39 = vmul.u32 2221713035, %v402_v34  ;;  %v483_v22 = vunpack.c.l.bf16 %v482_v20 }
  0x2a   : > { %v391_v38 = vmul.u32 2221713035, %v389_v33  ;;  %v392_v43 = vshrl.u32 %v390_v37, 16  ;;  %v404_v45 = vshrl.u32 %v403_v39, 16  ;;  %v484_v24 = vperm.slane %v483_v22, 0 }
  0x2c   : > { %v393_v44 = vshrl.u32 %v391_v38, 16  ;;  %v394_v49 = vxor.u32 %v392_v43, %v390_v37  ;;  %v405_v51 = vxor.u32 %v404_v45, %v403_v39 }
  0x2e   : > { %v395_v50 = vxor.u32 %v393_v44, %v391_v38  ;;  %v406_v57 = vxor.u32 %v405_v51, %v394_v49 }
  0x30   : > { %v407_v58 = vxor.u32 %v405_v51, %v395_v50  ;;  %v408_v61 = vshrl.u32 %v406_v57, 16 }
  0x32   : > { %v409_v62 = vshrl.u32 %v407_v58, 16  ;;  %v410_v2 = vxor.u32 %v408_v61, %v406_v57 }
  0x34   : > { %v411_v3 = vxor.u32 %v409_v62, %v407_v58  ;;  %v412_v5 = vmul.u32 2146121005, %v410_v2 }
  0x36   : > { %v413_v6 = vmul.u32 2146121005, %v411_v3  ;;  %v414_v9 = vshrl.u32 %v412_v5, 8 }
  0x38   : > { %v415_v10 = vshrl.u32 %v413_v6, 8  ;;  %vm416_vm1 = vcmp.ge.s32.totalorder %v414_v9, 1677721 }
  0x3a   : > { %vm417_vm2 = vcmp.ge.s32.totalorder %v415_v10, 1677721 }
  0x9b   : > { %v340_v40 = vpop.f32.mrf.mxu0 }
  0x9c   : > { %v341_v41 = vadd.f32 %v340_v40, %v309_v35 }
  0x9e   : > { %v345_v42 = vmul.f32 %v341_v41, %v341_v41 }
  0xa0   : > { %v347_v46 = vmul.f32 %v345_v42, %v341_v41 }
  0xa2   : > { %v349_v48 = vmul.f32 0.044715, %v347_v46 }
  0xa3   : > { %v342_v52 = vpop.f32.mrf.mxu0 }
  0xa4   : > { %v351_v53 = vadd.f32 %v349_v48, %v341_v41  ;;  %v343_v54 = vadd.f32 %v342_v52, %v309_v35 }
  0xa6   : > { %v353_v55 = vmul.f32 0.7978846, %v351_v53  ;;  %v346_v56 = vmul.f32 %v343_v54, %v343_v54 }
  0xa8   : > { %733 = vtanh.f32 %v353_v55  ;;  %v348_v59 = vmul.f32 %v346_v56, %v343_v54 }
  0xaa   : > { %v350_v60 = vmul.f32 0.044715, %v348_v59 }
  0xac   : > { %v352_v63 = vadd.f32 %v350_v60, %v343_v54 }
  0xae   : > { %v734_v0 = vpop.eup %733  ;;  %v354_v1 = vmul.f32 0.7978846, %v352_v63 }
  0xaf   : > { %v357_v4 = vadd.f32 1.0, %v734_v0 }
  0xb0   : > { %735 = vtanh.f32 %v354_v1 }
  0xb1   : > { %v359_v7 = vmul.f32 0.5, %v357_v4 }
  0xb3   : > { %v361_v13 = vmul.f32 %v359_v7, %v341_v41 }
  0xb5   : > { %v418_v15 = vsel %vm416_vm1, %v361_v13, 0.0 }
  0xb6   : > { %v736_v8 = vpop.eup %735 }
  0xb7   : > { %v358_v11 = vadd.f32 1.0, %v736_v8 }
  0xb9   : > { %v360_v12 = vmul.f32 0.5, %v358_v11 }
  0xbb   : > { %v362_v14 = vmul.f32 %v360_v12, %v343_v54 }
  0xbd   : > { %v419_v16 = vsel %vm417_vm2, %v362_v14, 0.0 }
  0xbe   : > { %v422_v17 = vpack.c.bf16 %v419_v16, %v418_v15 }
  0xc0   : > { %661 = vmatmul.msk.bf16.vlgmr.msra.gmra.mxu1 %vm455_vm3, %v422_v17 }
 0x13d   : > { %v468_v19 = vpop.f32.mrf.mxu1 }
 0x13e   : > { %v473_v21 = vadd.f32 %v468_v19, %v420_v18 }
 0x140   : > { %475 = vst.msk [vmem:[#allocation2] sm:$0xff] %vm298_vm0, %v473_v21 }
 0x145   : > { %v470_v25 = vpop.f32.mrf.mxu1 }
 0x146   : > { %v474_v26 = vadd.f32 %v470_v25, %v421_v23 }
 0x147   : > { %v480_v27 = vld [vmem:[#allocation2] sm:$0xff] }
 0x148   : > { %476 = vst.msk [vmem:[#allocation2 + $0x8] sm:$0xff] %vm298_vm0, %v474_v26  ;;  %v485_v28 = vadd.f32 %v484_v24, %v480_v27 }
 0x14a   : > { %v487_v29 = vpack.c.bf16 %v485_v28, %v485_v28 }
 0x14c   : > { %490 = vst.msk [vmem:[%s272_s12] sm:$0xf] %vm489_vm4, %v487_v29 }
 0x14f   : > { %v481_v30 = vld [vmem:[#allocation2 + $0x8] sm:$0xff] }
 0x150   : > { %v486_v31 = vadd.f32 %v484_v24, %v481_v30 }
 0x152   : > { %v488_v32 = vpack.c.bf16 %v486_v31, %v486_v31 }
 0x154   : > { %491 = vst.msk [vmem:[%s272_s12 + $0x4] sm:$0xf] %vm489_vm4, %v488_v32 }
 0x155   : > { %764 = shalt.err (!%p761_p5)
}
 0x156   : > { %s818_s21 = smov 64   ;;  %s819_s0 = smov 4  }
 0x157   : > { %675 = dma.vmem_to_hbm [thread:$0]  (%p898_p4), %s506_s13, 128, %s508_s14, %s493_s15, %s818_s21, %s818_s21, %s819_s0  }
 0x158 PF: > { %p681_p6 = scmp.ge.s32.totalorder %s815_s28, 2  ;;  %s522_s29 = sand.u32 1, %s795_s23  }
 0x159   : > { %s523_s7 = scalar_lea.sflag [#allocation6], %s522_s29 }
 0x15a   : > { %p678_p7 = pnand %p681_p6, %p905_p8 }
 0x15c   : > { %p679_p9 = pneg %p678_p7 }
 0x15e   : > { %790 = dma.done.wait (%p679_p9), %s523_s7, 128  }
 0x15f   : > { %792 = vsyncadd (%p679_p9), %s523_s7, 4294967168  ;;  %s20_s28 = sadd.s32 1, %s815_s28   ;;  %s993_s23 = smov %s799_s24 }
 0x160   : > { %p17_p10 = scmp.ge.s32.totalorder %s20_s28, 4   ;;  %s994_s24 = smov %s803_s25 }
 0x161   : > { %s995_s25 = smov %s911_s11  ;;  %s996_s26 = smov %s811_s27 }
 0x162   : > { %s997_s27 = smov %s999_s30  ;;  %19 = sbr.rel (!%p17_p10) target bundleno = 6 (0x6), region = 92 }
 0x167   :  { %529 = vsyncpa [#allocation6], 1 }
 0x168   :  { %531 = vsyncpa [#allocation6 + $0x1], 1 }

</bundles_post_ra>
